<compile_context>
chip_gen: v7x
topology: tpu7x:2x2x1
jax: 0.10.0
libtpu: 0.0.40
codegen_flags: <defaults>
</compile_context>

<pallas_src>
import functools

import jax
import jax.numpy as jnp
from jax.experimental import pallas as pl
from jax.experimental.pallas import tpu as pltpu


def _round_up(x, m):
    return (x + m - 1) // m * m


def mlp_agent_kernel(x_ref,
                     w1_ref, w2_ref, w3_ref, w4_ref, w5_ref,
                     b_ref,
                     out_ref):
    """Fused 5-layer MLP on one batch tile: relu(fc1..fc4), linear fc5."""
    wdt = w1_ref.dtype                  # weight / matmul dtype (f32 or bf16)

    def layer(h, w_ref, row, relu):
        d_out = w_ref.shape[1]
        # MXU matmul in weight dtype, accumulate in f32.
        acc = jnp.dot(h.astype(wdt), w_ref[...],
                      preferred_element_type=jnp.float32)
        # Bias read straight from the ref slice (no full-block vreg residency);
        # bias + ReLU epilogue stays in f32 (v5e VPU has no bf16).
        acc = acc + b_ref[row:row + 1, :d_out]
        return jnp.maximum(acc, 0.0) if relu else acc

    h = x_ref[...].astype(jnp.float32)
    h = layer(h, w1_ref, 0, True)       # fc1 + relu1
    h = layer(h, w2_ref, 1, True)       # fc2 + relu2
    h = layer(h, w3_ref, 2, True)       # fc3 + relu3
    h = layer(h, w4_ref, 3, True)       # fc4 + relu4
    q = layer(h, w5_ref, 4, False)      # fc5 (no relu)
    out_ref[...] = q.astype(out_ref.dtype)


@functools.partial(jax.jit,
                   static_argnames=("rnn_hidden_dim", "weight_dtype", "block_m"))
def mlp_agent_forward(inputs, hidden_state, params, rnn_hidden_dim,
                      weight_dtype=jnp.bfloat16, block_m=2048):
    """Replicates MLPAgent.forward: returns (q_values, reshaped_hidden)."""
    (w1, b1), (w2, b2), (w3, b3), (w4, b4), (w5, b5) = params
    batch, in_dim = inputs.shape
    d1, d2, d3, d4 = w1.shape[1], w2.shape[1], w3.shape[1], w4.shape[1]
    n_actions = w5.shape[1]
    in_itemsize = jnp.dtype(inputs.dtype).itemsize
    w_itemsize = jnp.dtype(weight_dtype).itemsize

    # Weights cast once to the MXU dtype; no row/column padding (block shapes
    # equal to the full array dims satisfy the (8,128) rule).
    w1c = w1.astype(weight_dtype)
    w2c = w2.astype(weight_dtype)
    w3c = w3.astype(weight_dtype)
    w4c = w4.astype(weight_dtype)
    w5c = w5.astype(weight_dtype)

    # Coalesce the 5 bias vectors into one (8, 256) f32 block (single DMA);
    # zero lanes past each layer's width are never read by the kernel.
    bmax = max(d1, d2, d3, d4, n_actions)
    bpack = jnp.zeros((8, bmax), jnp.float32)
    for row, b in enumerate((b1, b2, b3, b4, b5)):
        bpack = bpack.at[row, :b.shape[-1]].set(
            b.reshape(-1).astype(jnp.float32))

    # Batch tiling: aim for >=2 grid steps (v7x has 2 TCs; "parallel" shards
    # the grid across them), tile rows a multiple of 8, capped by block_m.
    tm = min(block_m, max(8, _round_up(-(-batch // 2), 8)))
    b_pad = _round_up(batch, tm)
    x = inputs if b_pad == batch else jnp.pad(inputs,
                                              ((0, b_pad - batch), (0, 0)))
    grid = (b_pad // tm,)
    resident = lambda i: (0, 0)        # weights/biases stay VMEM-resident

    flops = 2 * b_pad * (in_dim * d1 + d1 * d2 + d2 * d3 + d3 * d4
                         + d4 * n_actions)
    bytes_accessed = (
        x.size * in_itemsize
        + b_pad * n_actions * in_itemsize
        + (w1c.size + w2c.size + w3c.size + w4c.size + w5c.size) * w_itemsize
        + bpack.size * 4
    )
    cost = pl.CostEstimate(flops=flops, transcendentals=0,
                           bytes_accessed=bytes_accessed)

    out = pl.pallas_call(
        mlp_agent_kernel,
        out_shape=jax.ShapeDtypeStruct((b_pad, n_actions), inputs.dtype),
        grid=grid,
        in_specs=[
            pl.BlockSpec((tm, in_dim), lambda i: (i, 0)),   # x: tiled over batch
            pl.BlockSpec((in_dim, d1), resident),           # w1 (resident)
            pl.BlockSpec((d1, d2), resident),               # w2
            pl.BlockSpec((d2, d3), resident),               # w3
            pl.BlockSpec((d3, d4), resident),               # w4
            pl.BlockSpec((d4, n_actions), resident),        # w5
            pl.BlockSpec((8, bmax), resident),              # packed biases
        ],
        out_specs=pl.BlockSpec((tm, n_actions), lambda i: (i, 0)),
        compiler_params=pltpu.CompilerParams(
            dimension_semantics=("parallel",)),
        cost_estimate=cost,
    )(x, w1c, w2c, w3c, w4c, w5c, bpack)

    q = out if b_pad == batch else out[:batch]          # strip padded rows only
    # Hidden state is just reshaped and passed through (glue, no compute).
    h = hidden_state.reshape(-1, rnn_hidden_dim)
    return q, h


def make_params(key, input_shape, n_actions):
    """Deterministic Linear params; weights stored as [in, out], biases [1, out]."""
    dims = [(input_shape, 256), (256, 256), (256, 64), (64, 64),
            (64, n_actions)]
    params = []
    for (fan_in, fan_out) in dims:
        key, kw, kb = jax.random.split(key, 3)
        bound = 1.0 / jnp.sqrt(jnp.float32(fan_in))
        w = jax.random.uniform(kw, (fan_in, fan_out), jnp.float32, -bound, bound)
        b = jax.random.uniform(kb, (1, fan_out), jnp.float32, -bound, bound)
        params.append((w, b))
    return params


def reference_forward(inputs, hidden_state, params, rnn_hidden_dim):
    h = inputs
    for i, (w, b) in enumerate(params):
        h = h @ w + b
        if i < len(params) - 1:
            h = jnp.maximum(h, 0.0)
    return h, hidden_state.reshape(-1, rnn_hidden_dim)


if __name__ == "__main__":
    key = jax.random.PRNGKey(0)
    input_shape = 32
    n_actions = 8
    rnn_hidden_dim = 64

    # --- small-shape check (f32 weights, tight tolerance) --------------------
    batch = 8
    k_in, k_h, k_p = jax.random.split(key, 3)
    inputs = jax.random.normal(k_in, (batch, input_shape), jnp.float32)
    hidden_state = jax.random.normal(k_h, (batch, rnn_hidden_dim), jnp.float32)
    params = make_params(k_p, input_shape, n_actions)

    q, h = mlp_agent_forward(inputs, hidden_state, tuple(params),
                             rnn_hidden_dim, weight_dtype=jnp.float32)
    q = jax.block_until_ready(q)
    h = jax.block_until_ready(h)

    q_ref, h_ref = reference_forward(inputs, hidden_state, params,
                                     rnn_hidden_dim)
    assert q.shape == (batch, n_actions)
    assert h.shape == (batch, rnn_hidden_dim)
    assert jnp.allclose(q, q_ref, atol=1e-4, rtol=1e-4)
    assert jnp.allclose(h, h_ref)

    # --- bigger batch, multi-step grid, default bf16 weights ------------------
    batch2 = 200
    k_in2, k_h2 = jax.random.split(jax.random.PRNGKey(1))
    inputs2 = jax.random.normal(k_in2, (batch2, input_shape), jnp.float32)
    hidden2 = jax.random.normal(k_h2, (batch2, rnn_hidden_dim), jnp.float32)

    q2, h2 = mlp_agent_forward(inputs2, hidden2, tuple(params),
                               rnn_hidden_dim)
    q2 = jax.block_until_ready(q2)
    h2 = jax.block_until_ready(h2)

    q2_ref, h2_ref = reference_forward(inputs2, hidden2, params,
                                       rnn_hidden_dim)
    assert q2.shape == (batch2, n_actions)
    assert jnp.allclose(q2, q2_ref, atol=1e-1, rtol=1e-1)   # bf16 tolerance
    assert jnp.allclose(h2, h2_ref)

    print("KERNEL_OK")
</pallas_src>

<mosaic_0001>
module attributes {stable_mosaic.version = 11 : i64} {
  func.func @mlp_agent_kernel(%arg0: i32, %arg1: memref<8x32xf32, #tpu.memory_space<vmem>>, %arg2: memref<32x256xf32, #tpu.memory_space<vmem>>, %arg3: memref<256x256xf32, #tpu.memory_space<vmem>>, %arg4: memref<256x64xf32, #tpu.memory_space<vmem>>, %arg5: memref<64x64xf32, #tpu.memory_space<vmem>>, %arg6: memref<64x8xf32, #tpu.memory_space<vmem>>, %arg7: memref<8x256xf32, #tpu.memory_space<vmem>>, %arg8: memref<8x8xf32, #tpu.memory_space<vmem>>) attributes {dimension_semantics = [#tpu.dimension_semantics<parallel>], iteration_bounds = array<i64: 1>, scalar_prefetch = 0 : i64, scratch_operands = 0 : i64, tpu.core_type = #tpu.core_type<tc>, window_params = [{transform_indices = @transform_0, window_bounds = array<i64: 8, 32>}, {pipeline_mode = #tpu.pipeline_mode<synchronous>, transform_indices = @transform_1, window_bounds = array<i64: 32, 256>}, {pipeline_mode = #tpu.pipeline_mode<synchronous>, transform_indices = @transform_2, window_bounds = array<i64: 256, 256>}, {pipeline_mode = #tpu.pipeline_mode<synchronous>, transform_indices = @transform_3, window_bounds = array<i64: 256, 64>}, {pipeline_mode = #tpu.pipeline_mode<synchronous>, transform_indices = @transform_4, window_bounds = array<i64: 64, 64>}, {pipeline_mode = #tpu.pipeline_mode<synchronous>, transform_indices = @transform_5, window_bounds = array<i64: 64, 8>}, {pipeline_mode = #tpu.pipeline_mode<synchronous>, transform_indices = @transform_6, window_bounds = array<i64: 8, 256>}, {transform_indices = @transform_7, window_bounds = array<i64: 8, 8>}]} {
    %c0 = arith.constant 0 : index
    %c0_0 = arith.constant 0 : index
    %0 = vector.load %arg1[%c0, %c0_0] : memref<8x32xf32, #tpu.memory_space<vmem>>, vector<8x32xf32>
    %c0_1 = arith.constant 0 : index
    %c0_2 = arith.constant 0 : index
    %1 = vector.load %arg2[%c0_1, %c0_2] : memref<32x256xf32, #tpu.memory_space<vmem>>, vector<32x256xf32>
    %cst = arith.constant dense<0.000000e+00> : vector<8x256xf32>
    %2 = tpu.matmul %0, %1, %cst {dimension_numbers = #tpu.dot_dimension_numbers<[1], [0], [0], [1], [0, 0, 1, 1], [], []>} : vector<8x32xf32>, vector<32x256xf32>, vector<8x256xf32> -> vector<8x256xf32>
    %c0_3 = arith.constant 0 : index
    %c0_4 = arith.constant 0 : index
    %3 = vector.load %arg7[%c0_3, %c0_4] : memref<8x256xf32, #tpu.memory_space<vmem>>, vector<1x256xf32>
    %4 = vector.broadcast %3 : vector<1x256xf32> to vector<8x256xf32>
    %5 = arith.addf %2, %4 : vector<8x256xf32>
    %cst_5 = arith.constant 0.000000e+00 : f32
    %6 = vector.broadcast %cst_5 : f32 to vector<8x256xf32>
    %7 = arith.maximumf %5, %6 : vector<8x256xf32>
    %c0_6 = arith.constant 0 : index
    %c0_7 = arith.constant 0 : index
    %8 = vector.load %arg3[%c0_6, %c0_7] : memref<256x256xf32, #tpu.memory_space<vmem>>, vector<256x256xf32>
    %cst_8 = arith.constant dense<0.000000e+00> : vector<8x256xf32>
    %9 = tpu.matmul %7, %8, %cst_8 {dimension_numbers = #tpu.dot_dimension_numbers<[1], [0], [0], [1], [0, 0, 1, 1], [], []>} : vector<8x256xf32>, vector<256x256xf32>, vector<8x256xf32> -> vector<8x256xf32>
    %c1 = arith.constant 1 : index
    %c0_9 = arith.constant 0 : index
    %10 = vector.load %arg7[%c1, %c0_9] : memref<8x256xf32, #tpu.memory_space<vmem>>, vector<1x256xf32>
    %11 = vector.broadcast %10 : vector<1x256xf32> to vector<8x256xf32>
    %12 = arith.addf %9, %11 : vector<8x256xf32>
    %cst_10 = arith.constant 0.000000e+00 : f32
    %13 = vector.broadcast %cst_10 : f32 to vector<8x256xf32>
    %14 = arith.maximumf %12, %13 : vector<8x256xf32>
    %c0_11 = arith.constant 0 : index
    %c0_12 = arith.constant 0 : index
    %15 = vector.load %arg4[%c0_11, %c0_12] : memref<256x64xf32, #tpu.memory_space<vmem>>, vector<256x64xf32>
    %cst_13 = arith.constant dense<0.000000e+00> : vector<8x64xf32>
    %16 = tpu.matmul %14, %15, %cst_13 {dimension_numbers = #tpu.dot_dimension_numbers<[1], [0], [0], [1], [0, 0, 1, 1], [], []>} : vector<8x256xf32>, vector<256x64xf32>, vector<8x64xf32> -> vector<8x64xf32>
    %c2 = arith.constant 2 : index
    %c0_14 = arith.constant 0 : index
    %17 = vector.load %arg7[%c2, %c0_14] : memref<8x256xf32, #tpu.memory_space<vmem>>, vector<1x64xf32>
    %18 = vector.broadcast %17 : vector<1x64xf32> to vector<8x64xf32>
    %19 = arith.addf %16, %18 : vector<8x64xf32>
    %cst_15 = arith.constant 0.000000e+00 : f32
    %20 = vector.broadcast %cst_15 : f32 to vector<8x64xf32>
    %21 = arith.maximumf %19, %20 : vector<8x64xf32>
    %c0_16 = arith.constant 0 : index
    %c0_17 = arith.constant 0 : index
    %22 = vector.load %arg5[%c0_16, %c0_17] : memref<64x64xf32, #tpu.memory_space<vmem>>, vector<64x64xf32>
    %cst_18 = arith.constant dense<0.000000e+00> : vector<8x64xf32>
    %23 = tpu.matmul %21, %22, %cst_18 {dimension_numbers = #tpu.dot_dimension_numbers<[1], [0], [0], [1], [0, 0, 1, 1], [], []>} : vector<8x64xf32>, vector<64x64xf32>, vector<8x64xf32> -> vector<8x64xf32>
    %c3 = arith.constant 3 : index
    %c0_19 = arith.constant 0 : index
    %24 = vector.load %arg7[%c3, %c0_19] : memref<8x256xf32, #tpu.memory_space<vmem>>, vector<1x64xf32>
    %25 = vector.broadcast %24 : vector<1x64xf32> to vector<8x64xf32>
    %26 = arith.addf %23, %25 : vector<8x64xf32>
    %cst_20 = arith.constant 0.000000e+00 : f32
    %27 = vector.broadcast %cst_20 : f32 to vector<8x64xf32>
    %28 = arith.maximumf %26, %27 : vector<8x64xf32>
    %c0_21 = arith.constant 0 : index
    %c0_22 = arith.constant 0 : index
    %29 = vector.load %arg6[%c0_21, %c0_22] : memref<64x8xf32, #tpu.memory_space<vmem>>, vector<64x8xf32>
    %cst_23 = arith.constant dense<0.000000e+00> : vector<8x8xf32>
    %30 = tpu.matmul %28, %29, %cst_23 {dimension_numbers = #tpu.dot_dimension_numbers<[1], [0], [0], [1], [0, 0, 1, 1], [], []>} : vector<8x64xf32>, vector<64x8xf32>, vector<8x8xf32> -> vector<8x8xf32>
    %c4 = arith.constant 4 : index
    %c0_24 = arith.constant 0 : index
    %31 = vector.load %arg7[%c4, %c0_24] : memref<8x256xf32, #tpu.memory_space<vmem>>, vector<1x8xf32>
    %32 = vector.broadcast %31 : vector<1x8xf32> to vector<8x8xf32>
    %33 = arith.addf %30, %32 : vector<8x8xf32>
    %c0_25 = arith.constant 0 : index
    %c0_26 = arith.constant 0 : index
    %34 = vector.load %arg8[%c0_25, %c0_26] : memref<8x8xf32, #tpu.memory_space<vmem>>, vector<8x8xf32>
    tpu.vector_store %arg8[%c0_25, %c0_26], %33 {strides = array<i32>} : memref<8x8xf32, #tpu.memory_space<vmem>>, vector<8x8xf32>,
    return
  }
  func.func @transform_0(%arg0: i32) -> (i32, i32) {
    %c0_i32 = arith.constant 0 : i32
    %c0_i32_0 = arith.constant 0 : i32
    return %arg0, %c0_i32 : i32, i32
  }
  func.func @transform_1(%arg0: i32) -> (i32, i32) {
    %c0_i32 = arith.constant 0 : i32
    %c0_i32_0 = arith.constant 0 : i32
    %c0_i32_1 = arith.constant 0 : i32
    return %c0_i32, %c0_i32_0 : i32, i32
  }
  func.func @transform_2(%arg0: i32) -> (i32, i32) {
    %c0_i32 = arith.constant 0 : i32
    %c0_i32_0 = arith.constant 0 : i32
    %c0_i32_1 = arith.constant 0 : i32
    return %c0_i32, %c0_i32_0 : i32, i32
  }
  func.func @transform_3(%arg0: i32) -> (i32, i32) {
    %c0_i32 = arith.constant 0 : i32
    %c0_i32_0 = arith.constant 0 : i32
    %c0_i32_1 = arith.constant 0 : i32
    return %c0_i32, %c0_i32_0 : i32, i32
  }
  func.func @transform_4(%arg0: i32) -> (i32, i32) {
    %c0_i32 = arith.constant 0 : i32
    %c0_i32_0 = arith.constant 0 : i32
    %c0_i32_1 = arith.constant 0 : i32
    return %c0_i32, %c0_i32_0 : i32, i32
  }
  func.func @transform_5(%arg0: i32) -> (i32, i32) {
    %c0_i32 = arith.constant 0 : i32
    %c0_i32_0 = arith.constant 0 : i32
    %c0_i32_1 = arith.constant 0 : i32
    return %c0_i32, %c0_i32_0 : i32, i32
  }
  func.func @transform_6(%arg0: i32) -> (i32, i32) {
    %c0_i32 = arith.constant 0 : i32
    %c0_i32_0 = arith.constant 0 : i32
    %c0_i32_1 = arith.constant 0 : i32
    return %c0_i32, %c0_i32_0 : i32, i32
  }
  func.func @transform_7(%arg0: i32) -> (i32, i32) {
    %c0_i32 = arith.constant 0 : i32
    %c0_i32_0 = arith.constant 0 : i32
    return %arg0, %c0_i32 : i32, i32
  }
}

</mosaic_0001>

<bundles_post_ra>
// kernel: mlp_agent_forward.1
= control target key start
LH: loop header
LB: loop body
LE: loop exit
PB: predicated region body
PF: predicated region fallthrough
CT: control target
= control target key end

     0   :  { %12 = vsyncpa [#allocation3], 0  ;;  %s1118_s0 = inlined_call_operand.vmem [shape: f32[8,32], index: 0, kind: input, shape index: {}]   ;;  %s1119_s1 = inlined_call_operand.vmem [shape: f32[32,256], index: 1, kind: input, shape index: {}]   ;;  %s1120_s2 = inlined_call_operand.hbm [shape: f32[256,256], index: 2, kind: input, shape index: {}]   ;;  %s1121_s3 = inlined_call_operand.vmem [shape: f32[256,64], index: 3, kind: input, shape index: {}]   ;;  %s1122_s4 = inlined_call_operand.vmem [shape: f32[64,64], index: 4, kind: input, shape index: {}]   ;;  %s1123_s5 = inlined_call_operand.vmem [shape: f32[64,8], index: 5, kind: input, shape index: {}]   ;;  %s1124_s6 = inlined_call_operand.vmem [shape: f32[8,256], index: 6, kind: input, shape index: {}]   ;;  %s1125_s7 = inlined_call_operand.hbm [shape: f32[8,8], index: 7, kind: output, shape index: {}]  }
   0x1   :  { %13 = vsyncpa [#allocation4], 0  ;;  %s854_s24 = smov [#allocation2]   ;;  %s806_s28 = scalar_lea.hbm %s1120_s2, 8192 }
   0x2   :  { %s23_s25 = sshll.u32 %s854_s24, 4  ;;  %p807_p0 = scmp.ne.s32.totalorder %s1120_s2, %s806_s28  ;;  %s24_s25 = int_to_ptr.vmem [resolvable:$true] %s23_s25 }
   0x3   :  { %p810_p1 = scmp.lt.u32.totalorder %s806_s28, %s1120_s2 }
   0x5   :  { %p812_p2 = pnand %p810_p1, %p807_p0 }
   0x7   :  { %815 = shalt.err (!%p812_p2)
}
   0x8   :  { %s816_s10 = scalar_lea.vmem %s24_s25, 8192  ;;  %p821_p4 = scmp.lt.s32.totalorder %s24_s25, %s24_s25 }
   0x9   :  { %p817_p3 = scmp.ne.s32.totalorder %s24_s25, %s816_s10  ;;  %p822_p5 = scmp.lt.s32.totalorder %s816_s10, %s816_s10 }
   0xb   :  { %p823_p6 = por %p822_p5, %p821_p4 }
   0xd   :  { %p824_p7 = pnand %p823_p6, %p817_p3 }
   0xf   :  { %827 = shalt.err (!%p824_p7)
}
  0x10   :  { %s855_s11 = smov 256   ;;  %s856_s12 = smov 16  }
  0x11   :  { %29 = dma.hbm_to_vmem [thread:$0]  %s1120_s2, 8192, %s24_s25, [#allocation3], %s855_s11, %s855_s11, %s856_s12  }
  0x12   :  { %850 = dma.done.wait [#allocation3], 8192  }
  0x13   :  { %851 = vsyncadd [#allocation3], 4294959104  ;;  %v857_v0 = vmov 0.0   ;;  %v43_v1 = vld [vmem:[%s1119_s1 + $0x8] sm:$0xff]  ;;  %v45_v2 = vld [vmem:[%s1119_s1 + $0x18] sm:$0xff]  ;;  %vm62_vm0 = vcmask 261120  }
  0x14   :  { %130 = vmatprep.mubr.f32.mxu0 %v857_v0  ;;  %v42_v3 = vld [vmem:[%s1119_s1] sm:$0xff]  ;;  %v671_v4 = vpack.c.bf16 %v45_v2, %v43_v1  ;;  %v44_v5 = vld [vmem:[%s1119_s1 + $0x10] sm:$0xff]  ;;  %v47_v6 = vld [vmem:[%s1119_s1 + $0x28] sm:$0xff]  ;;  %vm859_vm1 = vmmov 0   ;;  %vm402_vm2 = vcmask 523264   ;;  %s860_s30 = smov [#allocation5]  }
  0x15   :  { %v49_v7 = vld [vmem:[%s1119_s1 + $0x38] sm:$0xff]  ;;  %v673_v8 = vpack.c.bf16 %v44_v5, %v42_v3  ;;  %v46_v10 = vld [vmem:[%s1119_s1 + $0x20] sm:$0xff]  ;;  %v48_v11 = vld [vmem:[%s1119_s1 + $0x30] sm:$0xff]  ;;  %vm559_vm3 = vcmask 64512  }
  0x16   :  { %v675_v9 = vpack.c.bf16 %v49_v7, %v47_v6  ;;  %672 = vmatprep.subr.bf16.mxu0 %v671_v4  ;;  %v140_v12 = vld [vmem:[#allocation2 + $0x8] sm:$0xff]  ;;  %v142_v13 = vld [vmem:[#allocation2 + $0x18] sm:$0xff]  ;;  %v139_v14 = vld [vmem:[#allocation2] sm:$0xff]  ;;  %v677_v15 = vpack.c.bf16 %v48_v11, %v46_v10 }
  0x17   :  { %674 = vmatpush1.bf16.msra.mxu0 %v673_v8  ;;  %v679_v16 = vpack.c.bf16 %v142_v13, %v140_v12  ;;  %v141_v17 = vld [vmem:[#allocation2 + $0x10] sm:$0xff]  ;;  %v144_v18 = vld [vmem:[#allocation2 + $0x28] sm:$0xff]  ;;  %v146_v19 = vld [vmem:[#allocation2 + $0x38] sm:$0xff] }
  0x18   :  { %676 = vmatprep.subr.bf16.mxu0 %v675_v9  ;;  %v681_v20 = vpack.c.bf16 %v141_v17, %v139_v14  ;;  %v683_v21 = vpack.c.bf16 %v146_v19, %v144_v18  ;;  %v143_v22 = vld [vmem:[#allocation2 + $0x20] sm:$0xff]  ;;  %v145_v23 = vld [vmem:[#allocation2 + $0x30] sm:$0xff]  ;;  %v148_v24 = vld [vmem:[#allocation2 + $0x48] sm:$0xff] }
  0x19   :  { %680 = vmatprep.subr.bf16.mxu1 %v679_v16  ;;  %v150_v25 = vld [vmem:[#allocation2 + $0x58] sm:$0xff]  ;;  %v685_v26 = vpack.c.bf16 %v145_v23, %v143_v22  ;;  %v41_v27 = vld [vmem:[%s1118_s0] sm:$0xff]  ;;  %v149_v30 = vld [vmem:[#allocation2 + $0x50] sm:$0xff]  ;;  %s567_s0 = sshll.u32 %s860_s30, 4  ;;  %s568_s0 = int_to_ptr.vmem [resolvable:$true] %s567_s0 }
  0x1a   :  { %682 = vmatpush1.bf16.msra.mxu1 %v681_v20  ;;  %v687_v28 = vpack.c.bf16 %v150_v25, %v148_v24  ;;  %v147_v29 = vld [vmem:[#allocation2 + $0x40] sm:$0xff]  ;;  %v152_v31 = vld [vmem:[#allocation2 + $0x68] sm:$0xff]  ;;  %v154_v32 = vld [vmem:[#allocation2 + $0x78] sm:$0xff]  ;;  %p833_p9 = scmp.lt.s32.totalorder %s568_s0, %s568_s0 }
  0x1b   :  { %678 = vmatpush1.bf16.msra.mxu0 %v677_v15  ;;  %684 = vmatprep.subr.bf16.mxu1 %v683_v21  ;;  %v689_v33 = vpack.c.bf16 %v149_v30, %v147_v29  ;;  %v691_v34 = vpack.c.bf16 %v154_v32, %v152_v31  ;;  %v151_v35 = vld [vmem:[#allocation2 + $0x60] sm:$0xff]  ;;  %v153_v36 = vld [vmem:[#allocation2 + $0x70] sm:$0xff]  ;;  %v156_v37 = vld [vmem:[#allocation2 + $0x88] sm:$0xff] }
  0x1c   :  { %v158_v38 = vld [vmem:[#allocation2 + $0x98] sm:$0xff]  ;;  %v693_v39 = vpack.c.bf16 %v153_v36, %v151_v35  ;;  %v155_v41 = vld [vmem:[#allocation2 + $0x80] sm:$0xff]  ;;  %v157_v42 = vld [vmem:[#allocation2 + $0x90] sm:$0xff] }
  0x1d   :  { %v695_v40 = vpack.c.bf16 %v158_v38, %v156_v37  ;;  %v160_v43 = vld [vmem:[#allocation2 + $0xa8] sm:$0xff]  ;;  %v162_v44 = vld [vmem:[#allocation2 + $0xb8] sm:$0xff]  ;;  %v697_v45 = vpack.c.bf16 %v157_v42, %v155_v41  ;;  %v159_v47 = vld [vmem:[#allocation2 + $0xa0] sm:$0xff] }
  0x1e   :  { %576 = vmatmul.mubr.msk.f32.vlgmr.msra.gmra.mrb[0].mxu0 %vm62_vm0, %v41_v27  ;;  %686 = vmatpush1.bf16.msra.mxu1 %v685_v26  ;;  %v699_v46 = vpack.c.bf16 %v162_v44, %v160_v43  ;;  %v161_v48 = vld [vmem:[#allocation2 + $0xb0] sm:$0xff]  ;;  %v164_v49 = vld [vmem:[#allocation2 + $0xc8] sm:$0xff]  ;;  %v166_v50 = vld [vmem:[#allocation2 + $0xd8] sm:$0xff] }
  0x1f   :  { %688 = vmatprep.subr.bf16.mxu1 %v687_v28  ;;  %v701_v51 = vpack.c.bf16 %v161_v48, %v159_v47  ;;  %v703_v52 = vpack.c.bf16 %v166_v50, %v164_v49  ;;  %v163_v53 = vld [vmem:[#allocation2 + $0xc0] sm:$0xff]  ;;  %v165_v54 = vld [vmem:[#allocation2 + $0xd0] sm:$0xff]  ;;  %v168_v55 = vld [vmem:[#allocation2 + $0xe8] sm:$0xff] }
  0x20   :  { %v170_v56 = vld [vmem:[#allocation2 + $0xf8] sm:$0xff]  ;;  %v705_v57 = vpack.c.bf16 %v165_v54, %v163_v53  ;;  %v167_v59 = vld [vmem:[#allocation2 + $0xe0] sm:$0xff]  ;;  %v169_v60 = vld [vmem:[#allocation2 + $0xf0] sm:$0xff] }
  0x21   :  { %v707_v58 = vpack.c.bf16 %v170_v56, %v168_v55  ;;  %v172_v61 = vld [vmem:[#allocation2 + $0x108] sm:$0xff]  ;;  %v174_v62 = vld [vmem:[#allocation2 + $0x118] sm:$0xff]  ;;  %v709_v63 = vpack.c.bf16 %v169_v60, %v167_v59  ;;  %v171_v2 = vld [vmem:[#allocation2 + $0x100] sm:$0xff] }
  0x22   :  { %690 = vmatpush1.bf16.msra.mxu1 %v689_v33  ;;  %v711_v1 = vpack.c.bf16 %v174_v62, %v172_v61  ;;  %v173_v3 = vld [vmem:[#allocation2 + $0x110] sm:$0xff]  ;;  %v176_v4 = vld [vmem:[#allocation2 + $0x128] sm:$0xff]  ;;  %v178_v5 = vld [vmem:[#allocation2 + $0x138] sm:$0xff] }
  0x23   :  { %692 = vmatprep.subr.bf16.mxu1 %v691_v34  ;;  %v713_v6 = vpack.c.bf16 %v173_v3, %v171_v2  ;;  %v715_v7 = vpack.c.bf16 %v178_v5, %v176_v4  ;;  %v175_v8 = vld [vmem:[#allocation2 + $0x120] sm:$0xff]  ;;  %v177_v9 = vld [vmem:[#allocation2 + $0x130] sm:$0xff]  ;;  %v180_v10 = vld [vmem:[#allocation2 + $0x148] sm:$0xff] }
  0x24   :  { %v182_v11 = vld [vmem:[#allocation2 + $0x158] sm:$0xff]  ;;  %v717_v12 = vpack.c.bf16 %v177_v9, %v175_v8  ;;  %v179_v14 = vld [vmem:[#allocation2 + $0x140] sm:$0xff]  ;;  %v181_v15 = vld [vmem:[#allocation2 + $0x150] sm:$0xff] }
  0x25   :  { %v719_v13 = vpack.c.bf16 %v182_v11, %v180_v10  ;;  %v184_v16 = vld [vmem:[#allocation2 + $0x168] sm:$0xff]  ;;  %v186_v17 = vld [vmem:[#allocation2 + $0x178] sm:$0xff]  ;;  %v721_v18 = vpack.c.bf16 %v181_v15, %v179_v14  ;;  %v183_v20 = vld [vmem:[#allocation2 + $0x160] sm:$0xff] }
  0x26   :  { %694 = vmatpush1.bf16.msra.mxu1 %v693_v39  ;;  %v723_v19 = vpack.c.bf16 %v186_v17, %v184_v16  ;;  %v185_v21 = vld [vmem:[#allocation2 + $0x170] sm:$0xff]  ;;  %v188_v22 = vld [vmem:[#allocation2 + $0x188] sm:$0xff]  ;;  %v190_v23 = vld [vmem:[#allocation2 + $0x198] sm:$0xff] }
  0x27   :  { %696 = vmatprep.subr.bf16.mxu1 %v695_v40  ;;  %v725_v24 = vpack.c.bf16 %v185_v21, %v183_v20  ;;  %v727_v25 = vpack.c.bf16 %v190_v23, %v188_v22  ;;  %v187_v26 = vld [vmem:[#allocation2 + $0x180] sm:$0xff]  ;;  %v189_v27 = vld [vmem:[#allocation2 + $0x190] sm:$0xff]  ;;  %v192_v28 = vld [vmem:[#allocation2 + $0x1a8] sm:$0xff]  ;;  %v52_v23 = vlaneseq }
  0x28   :  { %v194_v29 = vld [vmem:[#allocation2 + $0x1b8] sm:$0xff]  ;;  %v729_v30 = vpack.c.bf16 %v189_v27, %v187_v26  ;;  %v191_v32 = vld [vmem:[#allocation2 + $0x1a0] sm:$0xff]  ;;  %v193_v33 = vld [vmem:[#allocation2 + $0x1b0] sm:$0xff] }
  0x29   :  { %v731_v31 = vpack.c.bf16 %v194_v29, %v192_v28  ;;  %v196_v34 = vld [vmem:[#allocation2 + $0x1c8] sm:$0xff]  ;;  %v198_v35 = vld [vmem:[#allocation2 + $0x1d8] sm:$0xff]  ;;  %v733_v36 = vpack.c.bf16 %v193_v33, %v191_v32  ;;  %v195_v38 = vld [vmem:[#allocation2 + $0x1c0] sm:$0xff] }
  0x2a   :  { %698 = vmatpush1.bf16.msra.mxu1 %v697_v45  ;;  %v735_v37 = vpack.c.bf16 %v198_v35, %v196_v34  ;;  %v197_v39 = vld [vmem:[#allocation2 + $0x1d0] sm:$0xff]  ;;  %v200_v41 = vld [vmem:[#allocation2 + $0x1e8] sm:$0xff]  ;;  %v202_v42 = vld [vmem:[#allocation2 + $0x1f8] sm:$0xff] }
  0x2b   :  { %700 = vmatprep.subr.bf16.mxu1 %v699_v46  ;;  %v737_v40 = vpack.c.bf16 %v197_v39, %v195_v38  ;;  %v739_v43 = vpack.c.bf16 %v202_v42, %v200_v41  ;;  %v199_v44 = vld [vmem:[#allocation2 + $0x1e0] sm:$0xff]  ;;  %v201_v45 = vld [vmem:[#allocation2 + $0x1f0] sm:$0xff]  ;;  %v306_v48 = vld [vmem:[%s1121_s3 + $0x88] sm:$0xff] }
  0x2c   :  { %v741_v46 = vpack.c.bf16 %v201_v45, %v199_v44  ;;  %v305_v47 = vld [vmem:[%s1121_s3 + $0x80] sm:$0xff]  ;;  %v308_v53 = vld [vmem:[%s1121_s3 + $0x98] sm:$0xff]  ;;  %v291_v56 = vld [vmem:[%s1121_s3 + $0x10] sm:$0xff]  ;;  %v858_v45 = vmov 0.0|0.0  }
  0x2d   :  { %v289_v49 = vld [vmem:[%s1121_s3] sm:$0xff]  ;;  %v743_v50 = vpack.c.bf16 %v306_v48, %v305_v47  ;;  %v310_v59 = vld [vmem:[%s1121_s3 + $0xa8] sm:$0xff]  ;;  %v312_v2 = vld [vmem:[%s1121_s3 + $0xb8] sm:$0xff] }
  0x2e   :  { %702 = vmatpush1.bf16.msra.mxu1 %v701_v51  ;;  %v290_v51 = vld [vmem:[%s1121_s3 + $0x8] sm:$0xff]  ;;  %v293_v62 = vld [vmem:[%s1121_s3 + $0x20] sm:$0xff]  ;;  %v295_v5 = vld [vmem:[%s1121_s3 + $0x30] sm:$0xff] }
  0x2f   :  { %704 = vmatprep.subr.bf16.mxu1 %v703_v52  ;;  %v307_v52 = vld [vmem:[%s1121_s3 + $0x90] sm:$0xff]  ;;  %v745_v54 = vpack.c.bf16 %v290_v51, %v289_v49  ;;  %744 = vmatprep.subr.bf16.mxu0 %v743_v50  ;;  %v314_v8 = vld [vmem:[%s1121_s3 + $0xc8] sm:$0xff]  ;;  %v297_v11 = vld [vmem:[%s1121_s3 + $0x40] sm:$0xff] }
  0x30   :  { %v747_v55 = vpack.c.bf16 %v308_v53, %v307_v52  ;;  %v316_v14 = vld [vmem:[%s1121_s3 + $0xd8] sm:$0xff]  ;;  %v299_v17 = vld [vmem:[%s1121_s3 + $0x50] sm:$0xff]  ;;  %v318_v20 = vld [vmem:[%s1121_s3 + $0xe8] sm:$0xff] }
  0x31   :  { %746 = vmatpush3.bf16.msra.mxu0 %v745_v54  ;;  %v50_v26 = vld [vmem:[%s1124_s6] ss:$8 sm:$0x3]  ;;  %v319_v39 = vld [vmem:[%s1121_s3 + $0xf0] sm:$0xff] }
  0x32   :  { %706 = vmatpush1.bf16.msra.mxu1 %v705_v57  ;;  %v292_v57 = vld [vmem:[%s1121_s3 + $0x18] sm:$0xff]  ;;  %748 = vmatprep.subr.bf16.mxu0 %v747_v55  ;;  %v303_v42 = vld [vmem:[%s1121_s3 + $0x70] sm:$0xff]  ;;  %v393_v52 = vld [vmem:[%s1122_s4] sm:$0xff] }
  0x33   :  { %708 = vmatprep.subr.bf16.mxu1 %v707_v58  ;;  %v309_v58 = vld [vmem:[%s1121_s3 + $0xa0] sm:$0xff]  ;;  %v749_v60 = vpack.c.bf16 %v292_v57, %v291_v56  ;;  %v394_v53 = vld [vmem:[%s1122_s4 + $0x8] sm:$0xff] }
  0x34   :  { %v751_v61 = vpack.c.bf16 %v310_v59, %v309_v58  ;;  %v776_v56 = vpack.c.bf16 %v394_v53, %v393_v52  ;;  %v395_v58 = vld [vmem:[%s1122_s4 + $0x10] sm:$0xff]  ;;  %v396_v59 = vld [vmem:[%s1122_s4 + $0x18] sm:$0xff] }
  0x35   :  { %750 = vmatpush3.bf16.msra.mxu0 %v749_v60  ;;  %v779_v60 = vpack.c.bf16 %v396_v59, %v395_v58 }
  0x36   :  { %710 = vmatpush1.bf16.msra.mxu1 %v709_v63  ;;  %v294_v63 = vld [vmem:[%s1121_s3 + $0x28] sm:$0xff]  ;;  %752 = vmatprep.subr.bf16.mxu0 %v751_v61  ;;  %v397_v61 = vld [vmem:[%s1122_s4 + $0x20] sm:$0xff] }
  0x37   :  { %712 = vmatprep.subr.bf16.mxu1 %v711_v1  ;;  %v311_v1 = vld [vmem:[%s1121_s3 + $0xb0] sm:$0xff]  ;;  %v753_v3 = vpack.c.bf16 %v294_v63, %v293_v62  ;;  %v398_v62 = vld [vmem:[%s1122_s4 + $0x28] sm:$0xff] }
  0x38   :  { %v755_v4 = vpack.c.bf16 %v312_v2, %v311_v1  ;;  %v782_v63 = vpack.c.bf16 %v398_v62, %v397_v61  ;;  %v399_v1 = vld [vmem:[%s1122_s4 + $0x30] sm:$0xff]  ;;  %v400_v2 = vld [vmem:[%s1122_s4 + $0x38] sm:$0xff] }
  0x39   :  { %754 = vmatpush3.bf16.msra.mxu0 %v753_v3  ;;  %v785_v3 = vpack.c.bf16 %v400_v2, %v399_v1 }
  0x3a   :  { %714 = vmatpush1.bf16.msra.mxu1 %v713_v6  ;;  %v296_v6 = vld [vmem:[%s1121_s3 + $0x38] sm:$0xff]  ;;  %756 = vmatprep.subr.bf16.mxu0 %v755_v4 }
  0x3b   :  { %716 = vmatprep.subr.bf16.mxu1 %v715_v7  ;;  %v313_v7 = vld [vmem:[%s1121_s3 + $0xc0] sm:$0xff]  ;;  %v757_v9 = vpack.c.bf16 %v296_v6, %v295_v5 }
  0x3c   :  { %v759_v10 = vpack.c.bf16 %v314_v8, %v313_v7  ;;  %v321_v5 = vld [vmem:[%s1124_s6 + $0x2] ss:$0 sm:$0xff] }
  0x3d   :  { %758 = vmatpush3.bf16.msra.mxu0 %v757_v9  ;;  %v477_v8 = vld [vmem:[%s1123_s5] sm:$0xff]  ;;  %v478_v9 = vld [vmem:[%s1123_s5 + $0x8] sm:$0xff] }
  0x3e   :  { %718 = vmatpush1.bf16.msra.mxu1 %v717_v12  ;;  %v298_v12 = vld [vmem:[%s1121_s3 + $0x48] sm:$0xff]  ;;  %760 = vmatprep.subr.bf16.mxu0 %v759_v10 }
  0x3f   :  { %720 = vmatprep.subr.bf16.mxu1 %v719_v13  ;;  %v315_v13 = vld [vmem:[%s1121_s3 + $0xd0] sm:$0xff]  ;;  %v761_v15 = vpack.c.bf16 %v298_v12, %v297_v11  ;;  %v788_v11 = vpack.c.bf16 %v478_v9, %v477_v8 }
  0x40   :  { %v763_v16 = vpack.c.bf16 %v316_v14, %v315_v13  ;;  %v479_v13 = vld [vmem:[%s1123_s5 + $0x10] sm:$0xff]  ;;  %v480_v14 = vld [vmem:[%s1123_s5 + $0x18] sm:$0xff] }
  0x41   :  { %762 = vmatpush3.bf16.msra.mxu0 %v761_v15  ;;  %v791_v15 = vpack.c.bf16 %v480_v14, %v479_v13 }
  0x42   :  { %722 = vmatpush1.bf16.msra.mxu1 %v721_v18  ;;  %v300_v18 = vld [vmem:[%s1121_s3 + $0x58] sm:$0xff]  ;;  %764 = vmatprep.subr.bf16.mxu0 %v763_v16  ;;  %v481_v16 = vld [vmem:[%s1123_s5 + $0x20] sm:$0xff] }
  0x43   :  { %724 = vmatprep.subr.bf16.mxu1 %v723_v19  ;;  %v317_v19 = vld [vmem:[%s1121_s3 + $0xe0] sm:$0xff]  ;;  %v765_v21 = vpack.c.bf16 %v300_v18, %v299_v17  ;;  %v482_v17 = vld [vmem:[%s1123_s5 + $0x28] sm:$0xff] }
  0x44   :  { %v767_v22 = vpack.c.bf16 %v318_v20, %v317_v19  ;;  %v794_v18 = vpack.c.bf16 %v482_v17, %v481_v16  ;;  %v483_v19 = vld [vmem:[%s1123_s5 + $0x30] sm:$0xff] }
  0x45   :  { %766 = vmatpush3.bf16.msra.mxu0 %v765_v21  ;;  %v401_v21 = vld [vmem:[%s1124_s6 + $0x3] ss:$0 sm:$0xff] }
  0x46   :  { %726 = vmatpush1.bf16.msra.mxu1 %v725_v24  ;;  %768 = vmatprep.subr.bf16.mxu0 %v767_v22  ;;  %v53_v24 = vshrl.u32 %v52_v23, 7 }
  0x47   :  { %728 = vmatprep.subr.bf16.mxu1 %v727_v25 }
  0x48   :  { %v54_v25 = vsub.s32 0, %v53_v24  ;;  %v58_v27 = vsub.s32 1, %v53_v24 }
  0x4a   :  { %730 = vmatpush1.bf16.msra.mxu1 %v729_v30  ;;  %v55_v28 = vrot.slane %v50_v26, %v54_v25  ;;  %v59_v29 = vrot.slane %v50_v26, %v58_v27  ;;  %v485_v26 = vld [vmem:[%s1124_s6 + $0x4] ss:$0 sm:$0xff] }
  0x4b   :  { %732 = vmatprep.subr.bf16.mxu1 %v731_v31 }
  0x4e   :  { %734 = vmatpush1.bf16.msra.mxu1 %v733_v36  ;;  %v301_v36 = vld [vmem:[%s1121_s3 + $0x60] sm:$0xff] }
  0x4f   :  { %736 = vmatprep.subr.bf16.mxu1 %v735_v37  ;;  %v302_v37 = vld [vmem:[%s1121_s3 + $0x68] sm:$0xff] }
  0x50   :  { %v769_v38 = vpack.c.bf16 %v302_v37, %v301_v36 }
  0x52   :  { %738 = vmatpush1.bf16.msra.mxu1 %v737_v40  ;;  %770 = vmatpush3.bf16.msra.mxu0 %v769_v38  ;;  %v320_v40 = vld [vmem:[%s1121_s3 + $0xf8] sm:$0xff] }
  0x53   :  { %740 = vmatprep.subr.bf16.mxu1 %v739_v43  ;;  %v771_v41 = vpack.c.bf16 %v320_v40, %v319_v39  ;;  %v304_v43 = vld [vmem:[%s1121_s3 + $0x78] sm:$0xff] }
  0x54   :  { %v773_v44 = vpack.c.bf16 %v304_v43, %v303_v42 }
  0x55   :  { %772 = vmatprep.subr.bf16.mxu0 %v771_v41 }
  0x56   :  { %742 = vmatpush1.bf16.msra.mxu1 %v741_v46  ;;  %774 = vmatpush3.bf16.msra.mxu0 %v773_v44  ;;  %v577_v46 = vld [vmem:[%s1124_s6 + $0x1] ss:$8 sm:$0x3] }
  0x57   :  { %775 = vmatprep.subr.bf16.mxu0 %v858_v45  ;;  %v209_v47 = vrot.slane %v577_v46, %v54_v25  ;;  %v213_v48 = vrot.slane %v577_v46, %v58_v27 }
  0xf1   :  { %v132_v30 = vpop.f32.mrb[0].mxu0 }
  0xf2   :  { %v133_v31 = vadd.f32 %v132_v30, %v55_v28  ;;  %v134_v32 = vpop.f32.mrb[1].mxu0 }
  0xf3   :  { %v135_v33 = vadd.f32 %v134_v32, %v59_v29 }
  0xf4   :  { %v137_v35 = vmax.f32 %v133_v31, 0.0 }
  0xf5   :  { %v138_v34 = vmax.f32 %v135_v33, 0.0 }
  0xf7   :  { %280 = vmatprep.mubr.f32.mxu1 %v138_v34 }
  0xf8   :  { %281 = vmatmul.mubr.f32.vlgmr.msra.gmra.mrb[0].mxu1 %v137_v35 }
 0x1cb   :  { %v282_v49 = vpop.f32.mrb[0].mxu1 }
 0x1cc   :  { %v283_v50 = vadd.f32 %v282_v49, %v209_v47  ;;  %v284_v51 = vpop.f32.mrb[1].mxu1 }
 0x1cd   :  { %v285_v54 = vadd.f32 %v284_v51, %v213_v48 }
 0x1ce   :  { %v287_v57 = vmax.f32 %v283_v50, 0.0 }
 0x1cf   :  { %v288_v55 = vmax.f32 %v285_v54, 0.0 }
 0x1d1   :  { %386 = vmatprep.mubr.f32.mxu0 %v288_v55 }
 0x1d2   :  { %387 = vmatmul.mubr.f32.vlgmr.msra.gmra.mrb[2].mxu0 %v287_v57 }
 0x1d3   :  { %777 = vmatpush3.bf16.msra.mxu0 %v776_v56  ;;  %649 = vmatprep.mubr.msk.f32.mxu0 %vm859_vm1, %v857_v0 }
 0x1d4   :  { %778 = vmatprep.subr.bf16.mxu0 %v858_v45 }
 0x1d7   :  { %780 = vmatpush3.bf16.msra.mxu0 %v779_v60 }
 0x1d8   :  { %781 = vmatprep.subr.bf16.mxu0 %v858_v45 }
 0x1db   :  { %783 = vmatpush3.bf16.msra.mxu0 %v782_v63 }
 0x1dc   :  { %784 = vmatprep.subr.bf16.mxu0 %v858_v45 }
 0x1df   :  { %786 = vmatpush3.bf16.msra.mxu0 %v785_v3 }
 0x1e0   :  { %787 = vmatprep.subr.bf16.mxu0 %v858_v45 }
 0x2a5   :  { %v612_v4 = vpop.f32.mrb[2].mxu0 }
 0x2a6   :  { %v613_v6 = vpop.f32.mrb[3].mxu0 }
 0x2a7   :  { %v614_v7 = vadd.f32 %v613_v6, %v612_v4 }
 0x2a9   :  { %v389_v10 = vadd.f32 %v614_v7, %v321_v5 }
 0x2ab   :  { %v392_v12 = vmax.f32 %v389_v10, 0.0 }
 0x2ad   :  { %650 = vmatmul.mubr.msk.f32.vlgmr.msra.gmra.mrb[4].mxu0 %vm402_vm2, %v392_v12 }
 0x2ae   :  { %789 = vmatpush3.bf16.msra.mxu0 %v788_v11  ;;  %668 = vmatprep.mubr.msk.f32.mxu0 %vm859_vm1, %v857_v0  ;;  %v484_v0 = vld [vmem:[%s1123_s5 + $0x38] sm:$0xff]  ;;  %s828_s5 = scalar_lea.vmem %s568_s0, 128 }
 0x2af   :  { %790 = vmatprep.subr.bf16.mxu0 %v858_v45  ;;  %v797_v20 = vpack.c.bf16 %v484_v0, %v483_v19  ;;  %p829_p8 = scmp.ne.s32.totalorder %s568_s0, %s828_s5  ;;  %p834_p10 = scmp.lt.s32.totalorder %s828_s5, %s828_s5 }
 0x2b1   :  { %p835_p11 = por %p834_p10, %p833_p9 }
 0x2b2   :  { %792 = vmatpush3.bf16.msra.mxu0 %v791_v15 }
 0x2b3   :  { %793 = vmatprep.subr.bf16.mxu0 %v858_v45  ;;  %p836_p12 = pnand %p835_p11, %p829_p8 }
 0x2b6   :  { %795 = vmatpush3.bf16.msra.mxu0 %v794_v18 }
 0x2b7   :  { %796 = vmatprep.subr.bf16.mxu0 %v858_v45 }
 0x2ba   :  { %798 = vmatpush3.bf16.msra.mxu0 %v797_v20 }
 0x380   :  { %v472_v22 = vpop.f32.mrb[4].mxu0 }
 0x381   :  { %v473_v23 = vadd.f32 %v472_v22, %v401_v21  ;;  %v651_v24 = vpop.f32.mrb[5].mxu0 }
 0x383   :  { %v476_v25 = vmax.f32 %v473_v23, 0.0 }
 0x385   :  { %669 = vmatmul.mubr.msk.f32.vlgmr.msra.gmra.mrb[6].mxu0 %vm402_vm2, %v476_v25 }
 0x458   :  { %v555_v27 = vpop.f32.mrb[6].mxu0 }
 0x459   :  { %v556_v28 = vadd.f32 %v555_v27, %v485_v26  ;;  %v670_v29 = vpop.f32.mrb[7].mxu0 }
 0x45b   :  { %560 = vst.msk [vmem:[#allocation5] sm:$0xff] %vm559_vm3, %v556_v28 }
 0x45c   :  { %839 = shalt.err (!%p836_p12)
}
 0x45d   :  { %s840_s10 = scalar_lea.hbm %s1125_s7, 128 }
 0x45e   :  { %p841_p13 = scmp.ne.s32.totalorder %s1125_s7, %s840_s10  ;;  %p844_p0 = scmp.lt.u32.totalorder %s840_s10, %s1125_s7 }
 0x460   :  { %p846_p1 = pnand %p844_p0, %p841_p13 }
 0x462   :  { %849 = shalt.err (!%p846_p1)
}
 0x463   :  { %570 = dma.vmem_to_hbm [thread:$0]  %s568_s0, 128, %s1125_s7, [#allocation4]  }
 0x464   :  { %852 = dma.done.wait [#allocation4], 128  }
 0x465   :  { %853 = vsyncadd [#allocation4], 4294967168 }
 0x466   :  { %574 = vsyncpa [#allocation3], 1 }
 0x467   :  { %575 = vsyncpa [#allocation4], 1 }

</bundles_post_ra>
